<compile_context>
chip_gen: v7x
topology: tpu7x:2x2x1
jax: 0.10.0
libtpu: 0.0.40
codegen_flags: <defaults>
</compile_context>

<pallas_src>
import functools

import jax
import jax.numpy as jnp
from jax.experimental import pallas as pl
from jax.experimental.pallas import tpu as pltpu

LANE = 128
SUBLANE = 8


def _round_up(x, m):
    return (x + m - 1) // m * m


# -----------------------------------------------------------------------------
# Kernel body: one fused two-layer MLP per batch tile.
# -----------------------------------------------------------------------------
def _decoder_kernel(z_ref, w1_ref, b1_ref, w2_ref, b2_ref, out_ref):
    # z tile: (block_b, latent_p) f32.  Cast to bf16 only at the MXU inputs;
    # accumulation, bias add, ReLU and sigmoid stay in f32.
    z = z_ref[...]
    h = jnp.dot(z.astype(jnp.bfloat16), w1_ref[...],
                preferred_element_type=jnp.float32) + b1_ref[...]
    h = jnp.maximum(h, 0.0)
    logits = jnp.dot(h.astype(jnp.bfloat16), w2_ref[...],
                     preferred_element_type=jnp.float32) + b2_ref[...]
    out_ref[...] = jax.nn.sigmoid(logits).astype(out_ref.dtype)


# -----------------------------------------------------------------------------
# Hardware-aware heuristics.
# -----------------------------------------------------------------------------
_HW_INFO = None            # (num_tensorcores_per_chip, vmem_capacity_bytes)
_SINGLE_BUFFER_OK = None   # resolved lazily on the first pallas_call


def _hw_info():
    global _HW_INFO
    if _HW_INFO is not None:
        return _HW_INFO
    try:
        kind = jax.devices()[0].device_kind.lower()
    except Exception:
        kind = ""
    # Chips whose TensorCores are exposed as a megacore / multi-TC device.
    multi_tc = any(t in kind for t in ("v4", "v5p", "v7"))
    try:
        vmem_cap = int(pltpu.get_tpu_info().vmem_capacity_bytes)
    except Exception:
        vmem_cap = (64 if "v7" in kind else 128) * 1024 * 1024
    _HW_INFO = (2 if multi_tc else 1, vmem_cap)
    return _HW_INFO


def _weight_bytes(latent_p, hidden_p, input_p):
    # bf16 weights + f32 biases, single-buffered.
    return (latent_p * hidden_p + hidden_p * input_p) * 2 + (hidden_p + input_p) * 4


def _pick_block_b(B, latent_p, hidden_p, input_p, n_tc, vmem_cap):
    if n_tc >= 2:
        # Keep >= n_tc grid steps so the "parallel" batch axis splits across
        # TensorCores; 16-row alignment matches bf16 sublane packing.
        block_b = min(512, max(16, _round_up(pl.cdiv(B, n_tc), 16)))
    else:
        # Single TensorCore (v5e/v6e): one big tile when it fits, otherwise
        # 512-row tiles (a multiple of 256 keeps the 256-wide MXU full).
        block_b = _round_up(B, SUBLANE) if B <= 512 else 512
    # Shrink until single-buffered weights + double-buffered activation tiles
    # stay well under the chip's VMEM.
    budget = int(vmem_cap * 0.6)
    wbytes = _weight_bytes(latent_p, hidden_p, input_p)

    def footprint(bb):
        return wbytes + 2 * bb * (latent_p + input_p) * 4

    while block_b > SUBLANE and footprint(block_b) > budget:
        block_b = max(SUBLANE, _round_up(block_b // 2, SUBLANE))
    return int(block_b)


def _vmem_limit(block_b, latent_p, hidden_p, input_p, vmem_cap,
                weights_double_buffered):
    wmult = 2 if weights_double_buffered else 1
    need = (wmult * _weight_bytes(latent_p, hidden_p, input_p)
            + 2 * block_b * (latent_p + input_p) * 4
            + (4 << 20))                       # headroom for internal scratch
    return int(min(max(need, 16 << 20), int(vmem_cap * 0.9)))


# -----------------------------------------------------------------------------
# Forward pass.
# -----------------------------------------------------------------------------
@functools.partial(
    jax.jit,
    static_argnames=("input_dim", "block_b", "single_buffer_weights",
                     "vmem_limit"))
def _decoder_forward_impl(z, w1_p, b1_p, w2_p, b2_p, *, input_dim, block_b,
                          single_buffer_weights, vmem_limit):
    B, latent_dim = z.shape
    latent_p, hidden_p = w1_p.shape
    input_p = w2_p.shape[1]

    B_p = _round_up(B, block_b)
    grid = (B_p // block_b,)

    # Pad only when needed (static check): aligned shapes skip an extra HBM pass.
    z_p = z.astype(jnp.float32)
    if B_p != B or latent_p != latent_dim:
        z_p = jnp.pad(z_p, ((0, B_p - B), (0, latent_p - latent_dim)))

    if single_buffer_weights:
        def const_spec(shape):
            return pl.BlockSpec(shape, lambda i: (0, 0),
                                pipeline_mode=pl.Buffered(1))
    else:
        def const_spec(shape):
            return pl.BlockSpec(shape, lambda i: (0, 0))

    cost = pl.CostEstimate(
        flops=2 * B_p * (latent_p * hidden_p + hidden_p * input_p),
        transcendentals=B_p * input_p,  # sigmoid
        bytes_accessed=(B_p * latent_p * 4 + B_p * input_p * 4
                        + _weight_bytes(latent_p, hidden_p, input_p)),
    )

    out_p = pl.pallas_call(
        _decoder_kernel,
        out_shape=jax.ShapeDtypeStruct((B_p, input_p), jnp.float32),
        grid_spec=pltpu.PrefetchScalarGridSpec(
            num_scalar_prefetch=0,
            grid=grid,
            in_specs=[
                pl.BlockSpec((block_b, latent_p), lambda i: (i, 0)),  # z tile
                const_spec((latent_p, hidden_p)),                     # W_fc
                const_spec((1, hidden_p)),                            # b_fc
                const_spec((hidden_p, input_p)),                      # W_out
                const_spec((1, input_p)),                             # b_out
            ],
            out_specs=pl.BlockSpec((block_b, input_p), lambda i: (i, 0)),
        ),
        compiler_params=pltpu.CompilerParams(
            dimension_semantics=("parallel",),
            vmem_limit_bytes=vmem_limit,
        ),
        cost_estimate=cost,
    )(z_p, w1_p, b1_p, w2_p, b2_p)

    if B_p != B or input_p != input_dim:
        out_p = out_p[:B, :input_dim]
    return out_p


def prepare_params(params):
    """One-time lane-padding (to 128) + bf16 cast of the decoder weights.

    Doing this once keeps the per-call path free of weight HBM traffic beyond
    the kernel's own reads.  Weights are stored pre-transposed as (in, out).
    """
    w1, b1, w2, b2 = params["w1"], params["b1"], params["w2"], params["b2"]
    latent_dim, hidden_dim = w1.shape
    input_dim = w2.shape[1]
    latent_p = _round_up(latent_dim, LANE)
    hidden_p = _round_up(hidden_dim, LANE)
    input_p = _round_up(input_dim, LANE)
    w1_p = jnp.pad(w1, ((0, latent_p - latent_dim), (0, hidden_p - hidden_dim))
                   ).astype(jnp.bfloat16)
    b1_p = jnp.pad(b1.reshape(1, -1), ((0, 0), (0, hidden_p - hidden_dim))
                   ).astype(jnp.float32)
    w2_p = jnp.pad(w2, ((0, hidden_p - hidden_dim), (0, input_p - input_dim))
                   ).astype(jnp.bfloat16)
    b2_p = jnp.pad(b2.reshape(1, -1), ((0, 0), (0, input_p - input_dim))
                   ).astype(jnp.float32)
    return {
        "w1": w1_p, "b1": b1_p, "w2": w2_p, "b2": b2_p,
        "latent_dim": int(latent_dim), "hidden_dim": int(hidden_dim),
        "input_dim": int(input_dim),
    }


def decoder_forward(z, prepared, block_b=None):
    """Decoder forward: sigmoid(relu(z @ W1 + b1) @ W2 + b2).

    z: (B, latent_dim) float array (any B; the tail is padded internally).
    prepared: output of prepare_params().
    Returns (B, input_dim) float32.
    """
    global _SINGLE_BUFFER_OK
    w1_p, b1_p = prepared["w1"], prepared["b1"]
    w2_p, b2_p = prepared["w2"], prepared["b2"]
    input_dim = prepared["input_dim"]
    B = z.shape[0]
    latent_p, hidden_p = w1_p.shape
    input_p = w2_p.shape[1]
    n_tc, vmem_cap = _hw_info()

    if block_b is None:
        block_b = _pick_block_b(B, latent_p, hidden_p, input_p, n_tc, vmem_cap)
    block_b = int(block_b)

    def run(single_buffer):
        limit = _vmem_limit(block_b, latent_p, hidden_p, input_p, vmem_cap,
                            weights_double_buffered=not single_buffer)
        return _decoder_forward_impl(
            z, w1_p, b1_p, w2_p, b2_p, input_dim=input_dim, block_b=block_b,
            single_buffer_weights=single_buffer, vmem_limit=limit)

    if _SINGLE_BUFFER_OK is None:
        try:
            out = run(True)
            _SINGLE_BUFFER_OK = True
            return out
        except Exception:
            # pipeline_mode=pl.Buffered(1) is not supported by every
            # jax/Mosaic build; fall back to default double buffering.
            _SINGLE_BUFFER_OK = False
    return run(_SINGLE_BUFFER_OK)


# -----------------------------------------------------------------------------
# Init + references (mirror the PyTorch module).
# -----------------------------------------------------------------------------
def init_decoder_params(key, input_dim, hidden_dim, latent_dim, dtype=jnp.float32):
    """nn.Linear-style init, U(-1/sqrt(fan_in), 1/sqrt(fan_in)).

    Weights stored pre-transposed as (fan_in, fan_out); biases as (1, fan_out).
    """
    def linear(k, fan_in, fan_out):
        kw, kb = jax.random.split(k)
        bound = 1.0 / jnp.sqrt(fan_in)
        w = jax.random.uniform(kw, (fan_in, fan_out), dtype, -bound, bound)
        b = jax.random.uniform(kb, (1, fan_out), dtype, -bound, bound)
        return w, b

    k1, k2 = jax.random.split(key)
    w1, b1 = linear(k1, latent_dim, hidden_dim)   # decoder.fc
    w2, b2 = linear(k2, hidden_dim, input_dim)    # decoder.fc_output
    return {"w1": w1, "b1": b1, "w2": w2, "b2": b2}


def decoder_reference_f32(z, p):
    """Pure-f32 reference of the PyTorch forward pass."""
    hp = jax.lax.Precision.HIGHEST
    h = jax.nn.relu(jnp.dot(z, p["w1"], precision=hp) + p["b1"])
    return jax.nn.sigmoid(jnp.dot(h, p["w2"], precision=hp) + p["b2"])


def decoder_reference_bf16(z, p):
    """Reference that mimics the kernel's bf16-in / f32-accumulate matmuls."""
    hp = jax.lax.Precision.HIGHEST
    f32 = jnp.float32
    w1 = p["w1"].astype(jnp.bfloat16).astype(f32)
    w2 = p["w2"].astype(jnp.bfloat16).astype(f32)
    zb = z.astype(jnp.bfloat16).astype(f32)
    h = jax.nn.relu(jnp.dot(zb, w1, precision=hp) + p["b1"])
    hb = h.astype(jnp.bfloat16).astype(f32)
    return jax.nn.sigmoid(jnp.dot(hb, w2, precision=hp) + p["b2"])


if __name__ == "__main__":
    input_dim, hidden_dim, latent_dim = 64, 32, 16
    batch = 16

    key = jax.random.PRNGKey(0)
    kz, kp = jax.random.split(key)
    z = jax.random.normal(kz, (batch, latent_dim), jnp.float32)
    params = init_decoder_params(kp, input_dim, hidden_dim, latent_dim)
    prepared = prepare_params(params)   # one-time pad + bf16 cast

    out = decoder_forward(z, prepared)
    jax.block_until_ready(out)
    assert out.shape == (batch, input_dim)

    out_bf16_ref = decoder_reference_bf16(z, params)
    out_f32_ref = decoder_reference_f32(z, params)
    assert jnp.allclose(out, out_bf16_ref, atol=2e-3), "mismatch vs bf16-mimic ref"
    assert jnp.allclose(out, out_f32_ref, atol=2e-2), "mismatch vs f32 ref"

    # Ragged batch (not a multiple of the row block): tail is padded, not asserted.
    z_odd = jax.random.normal(kz, (10, latent_dim), jnp.float32)
    out_odd = decoder_forward(z_odd, prepared, block_b=8)
    jax.block_until_ready(out_odd)
    assert out_odd.shape == (10, input_dim)
    assert jnp.allclose(out_odd, decoder_reference_bf16(z_odd, params), atol=2e-3)

    print("KERNEL_OK")
</pallas_src>

<mosaic_0001>
module attributes {stable_mosaic.version = 11 : i64} {
  func.func @_decoder_kernel(%arg0: i32, %arg1: memref<16x128xf32, #tpu.memory_space<vmem>>, %arg2: memref<128x128xbf16, #tpu.memory_space<vmem>>, %arg3: memref<1x128xf32, #tpu.memory_space<vmem>>, %arg4: memref<128x128xbf16, #tpu.memory_space<vmem>>, %arg5: memref<1x128xf32, #tpu.memory_space<vmem>>, %arg6: memref<16x128xf32, #tpu.memory_space<vmem>>) attributes {dimension_semantics = [#tpu.dimension_semantics<parallel>], iteration_bounds = array<i64: 1>, scalar_prefetch = 0 : i64, scratch_operands = 0 : i64, tpu.core_type = #tpu.core_type<tc>, window_params = [{transform_indices = @transform_0, window_bounds = array<i64: 16, 128>}, {pipeline_mode = #tpu.pipeline_mode<synchronous>, transform_indices = @transform_1, window_bounds = array<i64: 128, 128>}, {pipeline_mode = #tpu.pipeline_mode<synchronous>, transform_indices = @transform_2, window_bounds = array<i64: 1, 128>}, {pipeline_mode = #tpu.pipeline_mode<synchronous>, transform_indices = @transform_3, window_bounds = array<i64: 128, 128>}, {pipeline_mode = #tpu.pipeline_mode<synchronous>, transform_indices = @transform_4, window_bounds = array<i64: 1, 128>}, {transform_indices = @transform_5, window_bounds = array<i64: 16, 128>}]} {
    %c0 = arith.constant 0 : index
    %c0_0 = arith.constant 0 : index
    %0 = vector.load %arg1[%c0, %c0_0] : memref<16x128xf32, #tpu.memory_space<vmem>>, vector<16x128xf32>
    %1 = arith.truncf %0 : vector<16x128xf32> to vector<16x128xbf16>
    %c0_1 = arith.constant 0 : index
    %c0_2 = arith.constant 0 : index
    %2 = vector.load %arg2[%c0_1, %c0_2] : memref<128x128xbf16, #tpu.memory_space<vmem>>, vector<128x128xbf16>
    %cst = arith.constant dense<0.000000e+00> : vector<16x128xf32>
    %3 = tpu.matmul %1, %2, %cst {dimension_numbers = #tpu.dot_dimension_numbers<[1], [0], [0], [1], [0, 0, 1, 1], [], []>} : vector<16x128xbf16>, vector<128x128xbf16>, vector<16x128xf32> -> vector<16x128xf32>
    %c0_3 = arith.constant 0 : index
    %c0_4 = arith.constant 0 : index
    %4 = vector.load %arg3[%c0_3, %c0_4] : memref<1x128xf32, #tpu.memory_space<vmem>>, vector<1x128xf32>
    %5 = vector.broadcast %4 : vector<1x128xf32> to vector<16x128xf32>
    %6 = arith.addf %3, %5 : vector<16x128xf32>
    %cst_5 = arith.constant 0.000000e+00 : f32
    %7 = vector.broadcast %cst_5 : f32 to vector<16x128xf32>
    %8 = arith.maximumf %6, %7 : vector<16x128xf32>
    %9 = arith.truncf %8 : vector<16x128xf32> to vector<16x128xbf16>
    %c0_6 = arith.constant 0 : index
    %c0_7 = arith.constant 0 : index
    %10 = vector.load %arg4[%c0_6, %c0_7] : memref<128x128xbf16, #tpu.memory_space<vmem>>, vector<128x128xbf16>
    %cst_8 = arith.constant dense<0.000000e+00> : vector<16x128xf32>
    %11 = tpu.matmul %9, %10, %cst_8 {dimension_numbers = #tpu.dot_dimension_numbers<[1], [0], [0], [1], [0, 0, 1, 1], [], []>} : vector<16x128xbf16>, vector<128x128xbf16>, vector<16x128xf32> -> vector<16x128xf32>
    %c0_9 = arith.constant 0 : index
    %c0_10 = arith.constant 0 : index
    %12 = vector.load %arg5[%c0_9, %c0_10] : memref<1x128xf32, #tpu.memory_space<vmem>>, vector<1x128xf32>
    %13 = vector.broadcast %12 : vector<1x128xf32> to vector<16x128xf32>
    %14 = arith.addf %11, %13 : vector<16x128xf32>
    %15 = arith.negf %14 : vector<16x128xf32>
    %16 = math.exp %15 : vector<16x128xf32>
    %cst_11 = arith.constant 1.000000e+00 : f32
    %17 = vector.broadcast %cst_11 : f32 to vector<16x128xf32>
    %18 = arith.addf %17, %16 : vector<16x128xf32>
    %19 = arith.divf %17, %18 : vector<16x128xf32>
    %c0_12 = arith.constant 0 : index
    %c0_13 = arith.constant 0 : index
    %20 = vector.load %arg6[%c0_12, %c0_13] : memref<16x128xf32, #tpu.memory_space<vmem>>, vector<16x128xf32>
    tpu.vector_store %arg6[%c0_12, %c0_13], %19 {strides = array<i32>} : memref<16x128xf32, #tpu.memory_space<vmem>>, vector<16x128xf32>,
    return
  }
  func.func @transform_0(%arg0: i32) -> (i32, i32) {
    %c0_i32 = arith.constant 0 : i32
    %c0_i32_0 = arith.constant 0 : i32
    return %arg0, %c0_i32 : i32, i32
  }
  func.func @transform_1(%arg0: i32) -> (i32, i32) {
    %c0_i32 = arith.constant 0 : i32
    %c0_i32_0 = arith.constant 0 : i32
    %c0_i32_1 = arith.constant 0 : i32
    return %c0_i32, %c0_i32_0 : i32, i32
  }
  func.func @transform_2(%arg0: i32) -> (i32, i32) {
    %c0_i32 = arith.constant 0 : i32
    %c0_i32_0 = arith.constant 0 : i32
    %c0_i32_1 = arith.constant 0 : i32
    return %c0_i32, %c0_i32_0 : i32, i32
  }
  func.func @transform_3(%arg0: i32) -> (i32, i32) {
    %c0_i32 = arith.constant 0 : i32
    %c0_i32_0 = arith.constant 0 : i32
    %c0_i32_1 = arith.constant 0 : i32
    return %c0_i32, %c0_i32_0 : i32, i32
  }
  func.func @transform_4(%arg0: i32) -> (i32, i32) {
    %c0_i32 = arith.constant 0 : i32
    %c0_i32_0 = arith.constant 0 : i32
    %c0_i32_1 = arith.constant 0 : i32
    return %c0_i32, %c0_i32_0 : i32, i32
  }
  func.func @transform_5(%arg0: i32) -> (i32, i32) {
    %c0_i32 = arith.constant 0 : i32
    %c0_i32_0 = arith.constant 0 : i32
    return %arg0, %c0_i32 : i32, i32
  }
}

module attributes {stable_mosaic.version = 11 : i64} {
  func.func @_decoder_kernel(%arg0: i32, %arg1: memref<16x128xf32, #tpu.memory_space<vmem>>, %arg2: memref<128x128xbf16, #tpu.memory_space<vmem>>, %arg3: memref<1x128xf32, #tpu.memory_space<vmem>>, %arg4: memref<128x128xbf16, #tpu.memory_space<vmem>>, %arg5: memref<1x128xf32, #tpu.memory_space<vmem>>, %arg6: memref<16x128xf32, #tpu.memory_space<vmem>>) attributes {dimension_semantics = [#tpu.dimension_semantics<parallel>], iteration_bounds = array<i64: 1>, scalar_prefetch = 0 : i64, scratch_operands = 0 : i64, tpu.core_type = #tpu.core_type<tc>, window_params = [{transform_indices = @transform_0, window_bounds = array<i64: 16, 128>}, {pipeline_mode = #tpu.pipeline_mode<synchronous>, transform_indices = @transform_1, window_bounds = array<i64: 128, 128>}, {pipeline_mode = #tpu.pipeline_mode<synchronous>, transform_indices = @transform_2, window_bounds = array<i64: 1, 128>}, {pipeline_mode = #tpu.pipeline_mode<synchronous>, transform_indices = @transform_3, window_bounds = array<i64: 128, 128>}, {pipeline_mode = #tpu.pipeline_mode<synchronous>, transform_indices = @transform_4, window_bounds = array<i64: 1, 128>}, {transform_indices = @transform_5, window_bounds = array<i64: 16, 128>}]} {
    %c0 = arith.constant 0 : index
    %c0_0 = arith.constant 0 : index
    %0 = vector.load %arg1[%c0, %c0_0] : memref<16x128xf32, #tpu.memory_space<vmem>>, vector<16x128xf32>
    %1 = arith.truncf %0 : vector<16x128xf32> to vector<16x128xbf16>
    %c0_1 = arith.constant 0 : index
    %c0_2 = arith.constant 0 : index
    %2 = vector.load %arg2[%c0_1, %c0_2] : memref<128x128xbf16, #tpu.memory_space<vmem>>, vector<128x128xbf16>
    %cst = arith.constant dense<0.000000e+00> : vector<16x128xf32>
    %3 = tpu.matmul %1, %2, %cst {dimension_numbers = #tpu.dot_dimension_numbers<[1], [0], [0], [1], [0, 0, 1, 1], [], []>} : vector<16x128xbf16>, vector<128x128xbf16>, vector<16x128xf32> -> vector<16x128xf32>
    %c0_3 = arith.constant 0 : index
    %c0_4 = arith.constant 0 : index
    %4 = vector.load %arg3[%c0_3, %c0_4] : memref<1x128xf32, #tpu.memory_space<vmem>>, vector<1x128xf32>
    %5 = vector.broadcast %4 : vector<1x128xf32> to vector<16x128xf32>
    %6 = arith.addf %3, %5 : vector<16x128xf32>
    %cst_5 = arith.constant 0.000000e+00 : f32
    %7 = vector.broadcast %cst_5 : f32 to vector<16x128xf32>
    %8 = arith.maximumf %6, %7 : vector<16x128xf32>
    %9 = arith.truncf %8 : vector<16x128xf32> to vector<16x128xbf16>
    %c0_6 = arith.constant 0 : index
    %c0_7 = arith.constant 0 : index
    %10 = vector.load %arg4[%c0_6, %c0_7] : memref<128x128xbf16, #tpu.memory_space<vmem>>, vector<128x128xbf16>
    %cst_8 = arith.constant dense<0.000000e+00> : vector<16x128xf32>
    %11 = tpu.matmul %9, %10, %cst_8 {dimension_numbers = #tpu.dot_dimension_numbers<[1], [0], [0], [1], [0, 0, 1, 1], [], []>} : vector<16x128xbf16>, vector<128x128xbf16>, vector<16x128xf32> -> vector<16x128xf32>
    %c0_9 = arith.constant 0 : index
    %c0_10 = arith.constant 0 : index
    %12 = vector.load %arg5[%c0_9, %c0_10] : memref<1x128xf32, #tpu.memory_space<vmem>>, vector<1x128xf32>
    %13 = vector.broadcast %12 : vector<1x128xf32> to vector<16x128xf32>
    %14 = arith.addf %11, %13 : vector<16x128xf32>
    %15 = arith.negf %14 : vector<16x128xf32>
    %16 = math.exp %15 : vector<16x128xf32>
    %cst_11 = arith.constant 1.000000e+00 : f32
    %17 = vector.broadcast %cst_11 : f32 to vector<16x128xf32>
    %18 = arith.addf %17, %16 : vector<16x128xf32>
    %19 = arith.divf %17, %18 : vector<16x128xf32>
    %c0_12 = arith.constant 0 : index
    %c0_13 = arith.constant 0 : index
    %20 = vector.load %arg6[%c0_12, %c0_13] : memref<16x128xf32, #tpu.memory_space<vmem>>, vector<16x128xf32>
    tpu.vector_store %arg6[%c0_12, %c0_13], %19 {strides = array<i32>} : memref<16x128xf32, #tpu.memory_space<vmem>>, vector<16x128xf32>,
    return
  }
  func.func @transform_0(%arg0: i32) -> (i32, i32) {
    %c0_i32 = arith.constant 0 : i32
    %c0_i32_0 = arith.constant 0 : i32
    return %arg0, %c0_i32 : i32, i32
  }
  func.func @transform_1(%arg0: i32) -> (i32, i32) {
    %c0_i32 = arith.constant 0 : i32
    %c0_i32_0 = arith.constant 0 : i32
    %c0_i32_1 = arith.constant 0 : i32
    return %c0_i32, %c0_i32_0 : i32, i32
  }
  func.func @transform_2(%arg0: i32) -> (i32, i32) {
    %c0_i32 = arith.constant 0 : i32
    %c0_i32_0 = arith.constant 0 : i32
    %c0_i32_1 = arith.constant 0 : i32
    return %c0_i32, %c0_i32_0 : i32, i32
  }
  func.func @transform_3(%arg0: i32) -> (i32, i32) {
    %c0_i32 = arith.constant 0 : i32
    %c0_i32_0 = arith.constant 0 : i32
    %c0_i32_1 = arith.constant 0 : i32
    return %c0_i32, %c0_i32_0 : i32, i32
  }
  func.func @transform_4(%arg0: i32) -> (i32, i32) {
    %c0_i32 = arith.constant 0 : i32
    %c0_i32_0 = arith.constant 0 : i32
    %c0_i32_1 = arith.constant 0 : i32
    return %c0_i32, %c0_i32_0 : i32, i32
  }
  func.func @transform_5(%arg0: i32) -> (i32, i32) {
    %c0_i32 = arith.constant 0 : i32
    %c0_i32_0 = arith.constant 0 : i32
    return %arg0, %c0_i32 : i32, i32
  }
}

</mosaic_0001>

<bundles_post_ra>
// kernel: _decoder_forward_impl.1
= control target key start
LH: loop header
LB: loop body
LE: loop exit
PB: predicated region body
PF: predicated region fallthrough
CT: control target
= control target key end

     0   :  { %10 = vsyncpa [#allocation3], 0  ;;  %s582_s0 = inlined_call_operand.vmem [shape: f32[16,128], index: 0, kind: input, shape index: {}]   ;;  %s583_s1 = inlined_call_operand.hbm [shape: bf16[128,128], index: 1, kind: input, shape index: {}]   ;;  %s584_s2 = inlined_call_operand.vmem [shape: f32[1,128], index: 2, kind: input, shape index: {}]   ;;  %s585_s3 = inlined_call_operand.hbm [shape: bf16[128,128], index: 3, kind: input, shape index: {}]   ;;  %s586_s4 = inlined_call_operand.vmem [shape: f32[1,128], index: 4, kind: input, shape index: {}]   ;;  %s587_s5 = inlined_call_operand.hbm [shape: f32[16,128], index: 5, kind: output, shape index: {}]  }
   0x1   :  { %11 = vsyncpa [#allocation6], 0 }
   0x2   :  { %12 = vsyncpa [#allocation4], 0  ;;  %s495_s18 = smov [#allocation2]   ;;  %s423_s22 = scalar_lea.hbm %s583_s1, 1024 }
   0x3   :  { %s20_s19 = sshll.u32 %s495_s18, 4  ;;  %p424_p0 = scmp.ne.s32.totalorder %s583_s1, %s423_s22  ;;  %s21_s19 = int_to_ptr.vmem [resolvable:$true] %s20_s19 }
   0x4   :  { %p427_p1 = scmp.lt.u32.totalorder %s423_s22, %s583_s1 }
   0x6   :  { %p429_p2 = pnand %p427_p1, %p424_p0 }
   0x8   :  { %432 = shalt.err (!%p429_p2)
}
   0x9   :  { %s433_s27 = scalar_lea.vmem %s21_s19, 1024  ;;  %p438_p4 = scmp.lt.s32.totalorder %s21_s19, %s21_s19 }
   0xa   :  { %p434_p3 = scmp.ne.s32.totalorder %s21_s19, %s433_s27  ;;  %p439_p5 = scmp.lt.s32.totalorder %s433_s27, %s433_s27 }
   0xc   :  { %p440_p6 = por %p439_p5, %p438_p4 }
   0xe   :  { %p441_p7 = pnand %p440_p6, %p434_p3 }
  0x10   :  { %444 = shalt.err (!%p441_p7)
}
  0x11   :  { %s496_s28 = smov 64   ;;  %s497_s29 = smov 4  }
  0x12   :  { %26 = dma.hbm_to_vmem [thread:$0]  %s583_s1, 1024, %s21_s19, [#allocation3], %s496_s28, %s496_s28, %s497_s29  }
  0x13   :  { %s498_s7 = smov [#allocation5]   ;;  %s445_s11 = scalar_lea.hbm %s585_s3, 1024 }
  0x14   :  { %s34_s8 = sshll.u32 %s498_s7, 4  ;;  %p446_p8 = scmp.ne.s32.totalorder %s585_s3, %s445_s11  ;;  %s35_s8 = int_to_ptr.vmem [resolvable:$true] %s34_s8 }
  0x15   :  { %p449_p9 = scmp.lt.u32.totalorder %s445_s11, %s585_s3 }
  0x17   :  { %p451_p10 = pnand %p449_p9, %p446_p8 }
  0x19   :  { %454 = shalt.err (!%p451_p10)
}
  0x1a   :  { %s455_s16 = scalar_lea.vmem %s35_s8, 1024  ;;  %p460_p12 = scmp.lt.s32.totalorder %s35_s8, %s35_s8 }
  0x1b   :  { %p456_p11 = scmp.ne.s32.totalorder %s35_s8, %s455_s16  ;;  %p461_p13 = scmp.lt.s32.totalorder %s455_s16, %s455_s16 }
  0x1d   :  { %p462_p0 = por %p461_p13, %p460_p12 }
  0x1f   :  { %p463_p1 = pnand %p462_p0, %p456_p11 }
  0x21   :  { %466 = shalt.err (!%p463_p1)
}
  0x22   :  { %40 = dma.hbm_to_vmem [thread:$0]  %s585_s3, 1024, %s35_s8, [#allocation6], %s496_s28, %s496_s28, %s497_s29  }
  0x23   :  { %489 = dma.done.wait [#allocation3], 1024  }
  0x24   :  { %490 = vsyncadd [#allocation3], 4294966272 }
  0x25   :  { %491 = dma.done.wait [#allocation6], 1024  }
  0x26   :  { %492 = vsyncadd [#allocation6], 4294966272  ;;  %v499_v0 = vmov 0.0   ;;  %vm500_vm0 = vmmov 0   ;;  %v399_v1 = vld [vmem:[#allocation2] sm:$0xff]   ;;  %v400_v2 = vld [vmem:[#allocation2 + $0x8] sm:$0xff]  }
  0x27   :  { %350 = vmatprep.subr.bf16.mxu0 %v499_v0  ;;  %366 = vmatprep.mubr.msk.bf16.mxu0 %vm500_vm0, %v499_v0  ;;  %v401_v3 = vld [vmem:[#allocation2 + $0x10] sm:$0xff]   ;;  %v407_v4 = vld [vmem:[#allocation5] sm:$0xff]   ;;  %v402_v5 = vld [vmem:[#allocation2 + $0x18] sm:$0xff]  }
  0x28   :  { %370 = vmatprep.subr.bf16.mxu1 %v499_v0  ;;  %386 = vmatprep.mubr.msk.bf16.mxu1 %vm500_vm0, %v499_v0  ;;  %v408_v6 = vld [vmem:[#allocation5 + $0x8] sm:$0xff]   ;;  %v403_v7 = vld [vmem:[#allocation2 + $0x20] sm:$0xff]   ;;  %v409_v8 = vld [vmem:[#allocation5 + $0x10] sm:$0xff]  }
  0x29   :  { %351 = vmatpush3.bf16.msra.mxu0 %v399_v1  ;;  %371 = vmatpush3.bf16.msra.mxu1 %v407_v4  ;;  %v404_v9 = vld [vmem:[#allocation2 + $0x28] sm:$0xff]   ;;  %v410_v10 = vld [vmem:[#allocation5 + $0x18] sm:$0xff]   ;;  %v405_v11 = vld [vmem:[#allocation2 + $0x30] sm:$0xff]  }
  0x2a   :  { %352 = vmatprep.subr.bf16.mxu0 %v499_v0  ;;  %372 = vmatprep.subr.bf16.mxu1 %v499_v0  ;;  %v411_v12 = vld [vmem:[#allocation5 + $0x20] sm:$0xff]   ;;  %v406_v13 = vld [vmem:[#allocation2 + $0x38] sm:$0xff]   ;;  %v50_v14 = vld [vmem:[%s582_s0] sm:$0xff] }
  0x2b   :  { %v51_v15 = vld [vmem:[%s582_s0 + $0x8] sm:$0xff]  ;;  %v412_v16 = vld [vmem:[#allocation5 + $0x28] sm:$0xff]   ;;  %v413_v18 = vld [vmem:[#allocation5 + $0x30] sm:$0xff]  }
  0x2c   :  { %v52_v17 = vpack.c.bf16 %v51_v15, %v50_v14  ;;  %v414_v19 = vld [vmem:[#allocation5 + $0x38] sm:$0xff]   ;;  %v312_v20 = vld [vmem:[%s584_s2] ss:$0 sm:$0xff]  ;;  %s501_s2 = smov [#allocation7]  }
  0x2d   :  { %353 = vmatpush3.bf16.msra.mxu0 %v400_v2  ;;  %373 = vmatpush3.bf16.msra.mxu1 %v408_v6  ;;  %v321_v30 = vld [vmem:[%s586_s4] ss:$0 sm:$0xff]  ;;  %s299_s24 = sshll.u32 %s501_s2, 4  ;;  %s300_s24 = int_to_ptr.vmem [resolvable:$true] %s299_s24 }
  0x2e   :  { %354 = vmatprep.subr.bf16.mxu0 %v499_v0  ;;  %374 = vmatprep.subr.bf16.mxu1 %v499_v0  ;;  %s467_s4 = scalar_lea.vmem %s300_s24, 256  ;;  %p472_p3 = scmp.lt.s32.totalorder %s300_s24, %s300_s24 }
  0x2f   :  { %p468_p2 = scmp.ne.s32.totalorder %s300_s24, %s467_s4  ;;  %p473_p4 = scmp.lt.s32.totalorder %s467_s4, %s467_s4 }
  0x31   :  { %355 = vmatpush3.bf16.msra.mxu0 %v401_v3  ;;  %375 = vmatpush3.bf16.msra.mxu1 %v409_v8  ;;  %p474_p5 = por %p473_p4, %p472_p3 }
  0x32   :  { %356 = vmatprep.subr.bf16.mxu0 %v499_v0  ;;  %376 = vmatprep.subr.bf16.mxu1 %v499_v0 }
  0x33   :  { %p475_p6 = pnand %p474_p5, %p468_p2 }
  0x35   :  { %357 = vmatpush3.bf16.msra.mxu0 %v402_v5  ;;  %377 = vmatpush3.bf16.msra.mxu1 %v410_v10 }
  0x36   :  { %358 = vmatprep.subr.bf16.mxu0 %v499_v0  ;;  %378 = vmatprep.subr.bf16.mxu1 %v499_v0 }
  0x39   :  { %359 = vmatpush3.bf16.msra.mxu0 %v403_v7  ;;  %379 = vmatpush3.bf16.msra.mxu1 %v411_v12 }
  0x3a   :  { %360 = vmatprep.subr.bf16.mxu0 %v499_v0  ;;  %380 = vmatprep.subr.bf16.mxu1 %v499_v0 }
  0x3d   :  { %361 = vmatpush3.bf16.msra.mxu0 %v404_v9  ;;  %381 = vmatpush3.bf16.msra.mxu1 %v412_v16 }
  0x3e   :  { %362 = vmatprep.subr.bf16.mxu0 %v499_v0  ;;  %382 = vmatprep.subr.bf16.mxu1 %v499_v0 }
  0x41   :  { %363 = vmatpush3.bf16.msra.mxu0 %v405_v11  ;;  %383 = vmatpush3.bf16.msra.mxu1 %v413_v18 }
  0x42   :  { %364 = vmatprep.subr.bf16.mxu0 %v499_v0  ;;  %384 = vmatprep.subr.bf16.mxu1 %v499_v0 }
  0x45   :  { %365 = vmatpush3.bf16.msra.mxu0 %v406_v13  ;;  %385 = vmatpush3.bf16.msra.mxu1 %v414_v19 }
  0x48   :  { %367 = vmatmul.mubr.bf16.vlgmr.msra.gmra.mrb[0].mxu0 %v52_v17 }
 0x11b   :  { %v158_v21 = vpop.f32.mrb[0].mxu0 }
 0x11c   :  { %v159_v22 = vadd.f32 %v312_v20, %v158_v21  ;;  %v368_v23 = vpop.f32.mrb[1].mxu0 }
 0x11d   :  { %v161_v24 = vpop.f32.mrb[2].mxu0 }
 0x11e   :  { %v162_v25 = vadd.f32 %v312_v20, %v161_v24  ;;  %v369_v26 = vpop.f32.mrb[3].mxu0  ;;  %v165_v27 = vmax.f32 %v159_v22, 0.0 }
 0x120   :  { %v166_v28 = vmax.f32 %v162_v25, 0.0 }
 0x122   :  { %v167_v29 = vpack.c.bf16 %v166_v28, %v165_v27 }
 0x124   :  { %387 = vmatmul.mubr.bf16.vlgmr.msra.gmra.mrb[0].mxu1 %v167_v29 }
 0x1f7   :  { %v273_v31 = vpop.f32.mrb[0].mxu1 }
 0x1f8   :  { %v274_v32 = vadd.f32 %v321_v30, %v273_v31  ;;  %v388_v33 = vpop.f32.mrb[1].mxu1 }
 0x1f9   :  { %v276_v34 = vpop.f32.mrb[2].mxu1 }
 0x1fa   :  { %v330_v35 = vmul.f32 -1.442695, %v274_v32  ;;  %v277_v36 = vadd.f32 %v321_v30, %v276_v34  ;;  %v389_v37 = vpop.f32.mrb[3].mxu1 }
 0x1fc   :  { %415 = vpow2.f32 %v330_v35  ;;  %v331_v38 = vmul.f32 -1.442695, %v277_v36 }
 0x1fe   :  { %417 = vpow2.f32 %v331_v38 }
 0x206   :  { %v416_v39 = vpop.eup %415 }
 0x207   :  { %v286_v40 = vadd.f32 1.0, %v416_v39 }
 0x208   :  { %v418_v41 = vpop.eup %417 }
 0x209   :  { %419 = vrcp.f32 %v286_v40  ;;  %v287_v42 = vadd.f32 1.0, %v418_v41 }
 0x20b   :  { %421 = vrcp.f32 %v287_v42 }
 0x213   :  { %v420_v43 = vpop.eup %419 }
 0x214   :  { %292 = vst [vmem:[#allocation7] sm:$0xff] %v420_v43 }
 0x215   :  { %v422_v44 = vpop.eup %421 }
 0x216   :  { %293 = vst [vmem:[#allocation7 + $0x8] sm:$0xff] %v422_v44 }
 0x217   :  { %478 = shalt.err (!%p475_p6)
}
 0x218   :  { %s479_s27 = scalar_lea.hbm %s587_s5, 256 }
 0x219   :  { %p480_p7 = scmp.ne.s32.totalorder %s587_s5, %s479_s27  ;;  %p483_p8 = scmp.lt.u32.totalorder %s479_s27, %s587_s5 }
 0x21b   :  { %p485_p9 = pnand %p483_p8, %p480_p7 }
 0x21d   :  { %488 = shalt.err (!%p485_p9)
}
 0x21e   :  { %s502_s7 = smov 128   ;;  %s503_s8 = smov 8  }
 0x21f   :  { %305 = dma.vmem_to_hbm [thread:$0]  %s300_s24, 256, %s587_s5, [#allocation4], %s502_s7, %s502_s7, %s503_s8  }
 0x220   :  { %493 = dma.done.wait [#allocation4], 256  }
 0x221   :  { %494 = vsyncadd [#allocation4], 4294967040 }
 0x222   :  { %309 = vsyncpa [#allocation3], 1 }
 0x223   :  { %310 = vsyncpa [#allocation6], 1 }
 0x224   :  { %311 = vsyncpa [#allocation4], 1 }

// kernel: _decoder_forward_impl.1
= control target key start
LH: loop header
LB: loop body
LE: loop exit
PB: predicated region body
PF: predicated region fallthrough
CT: control target
= control target key end

     0   :  { %10 = vsyncpa [#allocation3], 0  ;;  %s582_s0 = inlined_call_operand.vmem [shape: f32[16,128], index: 0, kind: input, shape index: {}]   ;;  %s583_s1 = inlined_call_operand.hbm [shape: bf16[128,128], index: 1, kind: input, shape index: {}]   ;;  %s584_s2 = inlined_call_operand.vmem [shape: f32[1,128], index: 2, kind: input, shape index: {}]   ;;  %s585_s3 = inlined_call_operand.hbm [shape: bf16[128,128], index: 3, kind: input, shape index: {}]   ;;  %s586_s4 = inlined_call_operand.vmem [shape: f32[1,128], index: 4, kind: input, shape index: {}]   ;;  %s587_s5 = inlined_call_operand.hbm [shape: f32[16,128], index: 5, kind: output, shape index: {}]  }
   0x1   :  { %11 = vsyncpa [#allocation6], 0 }
   0x2   :  { %12 = vsyncpa [#allocation4], 0  ;;  %s495_s18 = smov [#allocation2]   ;;  %s423_s22 = scalar_lea.hbm %s583_s1, 1024 }
   0x3   :  { %s20_s19 = sshll.u32 %s495_s18, 4  ;;  %p424_p0 = scmp.ne.s32.totalorder %s583_s1, %s423_s22  ;;  %s21_s19 = int_to_ptr.vmem [resolvable:$true] %s20_s19 }
   0x4   :  { %p427_p1 = scmp.lt.u32.totalorder %s423_s22, %s583_s1 }
   0x6   :  { %p429_p2 = pnand %p427_p1, %p424_p0 }
   0x8   :  { %432 = shalt.err (!%p429_p2)
}
   0x9   :  { %s433_s27 = scalar_lea.vmem %s21_s19, 1024  ;;  %p438_p4 = scmp.lt.s32.totalorder %s21_s19, %s21_s19 }
   0xa   :  { %p434_p3 = scmp.ne.s32.totalorder %s21_s19, %s433_s27  ;;  %p439_p5 = scmp.lt.s32.totalorder %s433_s27, %s433_s27 }
   0xc   :  { %p440_p6 = por %p439_p5, %p438_p4 }
   0xe   :  { %p441_p7 = pnand %p440_p6, %p434_p3 }
  0x10   :  { %444 = shalt.err (!%p441_p7)
}
  0x11   :  { %s496_s28 = smov 64   ;;  %s497_s29 = smov 4  }
  0x12   :  { %26 = dma.hbm_to_vmem [thread:$0]  %s583_s1, 1024, %s21_s19, [#allocation3], %s496_s28, %s496_s28, %s497_s29  }
  0x13   :  { %s498_s7 = smov [#allocation5]   ;;  %s445_s11 = scalar_lea.hbm %s585_s3, 1024 }
  0x14   :  { %s34_s8 = sshll.u32 %s498_s7, 4  ;;  %p446_p8 = scmp.ne.s32.totalorder %s585_s3, %s445_s11  ;;  %s35_s8 = int_to_ptr.vmem [resolvable:$true] %s34_s8 }
  0x15   :  { %p449_p9 = scmp.lt.u32.totalorder %s445_s11, %s585_s3 }
  0x17   :  { %p451_p10 = pnand %p449_p9, %p446_p8 }
  0x19   :  { %454 = shalt.err (!%p451_p10)
}
  0x1a   :  { %s455_s16 = scalar_lea.vmem %s35_s8, 1024  ;;  %p460_p12 = scmp.lt.s32.totalorder %s35_s8, %s35_s8 }
  0x1b   :  { %p456_p11 = scmp.ne.s32.totalorder %s35_s8, %s455_s16  ;;  %p461_p13 = scmp.lt.s32.totalorder %s455_s16, %s455_s16 }
  0x1d   :  { %p462_p0 = por %p461_p13, %p460_p12 }
  0x1f   :  { %p463_p1 = pnand %p462_p0, %p456_p11 }
  0x21   :  { %466 = shalt.err (!%p463_p1)
}
  0x22   :  { %40 = dma.hbm_to_vmem [thread:$0]  %s585_s3, 1024, %s35_s8, [#allocation6], %s496_s28, %s496_s28, %s497_s29  }
  0x23   :  { %489 = dma.done.wait [#allocation3], 1024  }
  0x24   :  { %490 = vsyncadd [#allocation3], 4294966272 }
  0x25   :  { %491 = dma.done.wait [#allocation6], 1024  }
  0x26   :  { %492 = vsyncadd [#allocation6], 4294966272  ;;  %v499_v0 = vmov 0.0   ;;  %vm500_vm0 = vmmov 0   ;;  %v399_v1 = vld [vmem:[#allocation2] sm:$0xff]   ;;  %v400_v2 = vld [vmem:[#allocation2 + $0x8] sm:$0xff]  }
  0x27   :  { %350 = vmatprep.subr.bf16.mxu0 %v499_v0  ;;  %366 = vmatprep.mubr.msk.bf16.mxu0 %vm500_vm0, %v499_v0  ;;  %v401_v3 = vld [vmem:[#allocation2 + $0x10] sm:$0xff]   ;;  %v407_v4 = vld [vmem:[#allocation5] sm:$0xff]   ;;  %v402_v5 = vld [vmem:[#allocation2 + $0x18] sm:$0xff]  }
  0x28   :  { %370 = vmatprep.subr.bf16.mxu1 %v499_v0  ;;  %386 = vmatprep.mubr.msk.bf16.mxu1 %vm500_vm0, %v499_v0  ;;  %v408_v6 = vld [vmem:[#allocation5 + $0x8] sm:$0xff]   ;;  %v403_v7 = vld [vmem:[#allocation2 + $0x20] sm:$0xff]   ;;  %v409_v8 = vld [vmem:[#allocation5 + $0x10] sm:$0xff]  }
  0x29   :  { %351 = vmatpush3.bf16.msra.mxu0 %v399_v1  ;;  %371 = vmatpush3.bf16.msra.mxu1 %v407_v4  ;;  %v404_v9 = vld [vmem:[#allocation2 + $0x28] sm:$0xff]   ;;  %v410_v10 = vld [vmem:[#allocation5 + $0x18] sm:$0xff]   ;;  %v405_v11 = vld [vmem:[#allocation2 + $0x30] sm:$0xff]  }
  0x2a   :  { %352 = vmatprep.subr.bf16.mxu0 %v499_v0  ;;  %372 = vmatprep.subr.bf16.mxu1 %v499_v0  ;;  %v411_v12 = vld [vmem:[#allocation5 + $0x20] sm:$0xff]   ;;  %v406_v13 = vld [vmem:[#allocation2 + $0x38] sm:$0xff]   ;;  %v50_v14 = vld [vmem:[%s582_s0] sm:$0xff] }
  0x2b   :  { %v51_v15 = vld [vmem:[%s582_s0 + $0x8] sm:$0xff]  ;;  %v412_v16 = vld [vmem:[#allocation5 + $0x28] sm:$0xff]   ;;  %v413_v18 = vld [vmem:[#allocation5 + $0x30] sm:$0xff]  }
  0x2c   :  { %v52_v17 = vpack.c.bf16 %v51_v15, %v50_v14  ;;  %v414_v19 = vld [vmem:[#allocation5 + $0x38] sm:$0xff]   ;;  %v312_v20 = vld [vmem:[%s584_s2] ss:$0 sm:$0xff]  ;;  %s501_s2 = smov [#allocation7]  }
  0x2d   :  { %353 = vmatpush3.bf16.msra.mxu0 %v400_v2  ;;  %373 = vmatpush3.bf16.msra.mxu1 %v408_v6  ;;  %v321_v30 = vld [vmem:[%s586_s4] ss:$0 sm:$0xff]  ;;  %s299_s24 = sshll.u32 %s501_s2, 4  ;;  %s300_s24 = int_to_ptr.vmem [resolvable:$true] %s299_s24 }
  0x2e   :  { %354 = vmatprep.subr.bf16.mxu0 %v499_v0  ;;  %374 = vmatprep.subr.bf16.mxu1 %v499_v0  ;;  %s467_s4 = scalar_lea.vmem %s300_s24, 256  ;;  %p472_p3 = scmp.lt.s32.totalorder %s300_s24, %s300_s24 }
  0x2f   :  { %p468_p2 = scmp.ne.s32.totalorder %s300_s24, %s467_s4  ;;  %p473_p4 = scmp.lt.s32.totalorder %s467_s4, %s467_s4 }
  0x31   :  { %355 = vmatpush3.bf16.msra.mxu0 %v401_v3  ;;  %375 = vmatpush3.bf16.msra.mxu1 %v409_v8  ;;  %p474_p5 = por %p473_p4, %p472_p3 }
  0x32   :  { %356 = vmatprep.subr.bf16.mxu0 %v499_v0  ;;  %376 = vmatprep.subr.bf16.mxu1 %v499_v0 }
  0x33   :  { %p475_p6 = pnand %p474_p5, %p468_p2 }
  0x35   :  { %357 = vmatpush3.bf16.msra.mxu0 %v402_v5  ;;  %377 = vmatpush3.bf16.msra.mxu1 %v410_v10 }
  0x36   :  { %358 = vmatprep.subr.bf16.mxu0 %v499_v0  ;;  %378 = vmatprep.subr.bf16.mxu1 %v499_v0 }
  0x39   :  { %359 = vmatpush3.bf16.msra.mxu0 %v403_v7  ;;  %379 = vmatpush3.bf16.msra.mxu1 %v411_v12 }
  0x3a   :  { %360 = vmatprep.subr.bf16.mxu0 %v499_v0  ;;  %380 = vmatprep.subr.bf16.mxu1 %v499_v0 }
  0x3d   :  { %361 = vmatpush3.bf16.msra.mxu0 %v404_v9  ;;  %381 = vmatpush3.bf16.msra.mxu1 %v412_v16 }
  0x3e   :  { %362 = vmatprep.subr.bf16.mxu0 %v499_v0  ;;  %382 = vmatprep.subr.bf16.mxu1 %v499_v0 }
  0x41   :  { %363 = vmatpush3.bf16.msra.mxu0 %v405_v11  ;;  %383 = vmatpush3.bf16.msra.mxu1 %v413_v18 }
  0x42   :  { %364 = vmatprep.subr.bf16.mxu0 %v499_v0  ;;  %384 = vmatprep.subr.bf16.mxu1 %v499_v0 }
  0x45   :  { %365 = vmatpush3.bf16.msra.mxu0 %v406_v13  ;;  %385 = vmatpush3.bf16.msra.mxu1 %v414_v19 }
  0x48   :  { %367 = vmatmul.mubr.bf16.vlgmr.msra.gmra.mrb[0].mxu0 %v52_v17 }
 0x11b   :  { %v158_v21 = vpop.f32.mrb[0].mxu0 }
 0x11c   :  { %v159_v22 = vadd.f32 %v312_v20, %v158_v21  ;;  %v368_v23 = vpop.f32.mrb[1].mxu0 }
 0x11d   :  { %v161_v24 = vpop.f32.mrb[2].mxu0 }
 0x11e   :  { %v162_v25 = vadd.f32 %v312_v20, %v161_v24  ;;  %v369_v26 = vpop.f32.mrb[3].mxu0  ;;  %v165_v27 = vmax.f32 %v159_v22, 0.0 }
 0x120   :  { %v166_v28 = vmax.f32 %v162_v25, 0.0 }
 0x122   :  { %v167_v29 = vpack.c.bf16 %v166_v28, %v165_v27 }
 0x124   :  { %387 = vmatmul.mubr.bf16.vlgmr.msra.gmra.mrb[0].mxu1 %v167_v29 }
 0x1f7   :  { %v273_v31 = vpop.f32.mrb[0].mxu1 }
 0x1f8   :  { %v274_v32 = vadd.f32 %v321_v30, %v273_v31  ;;  %v388_v33 = vpop.f32.mrb[1].mxu1 }
 0x1f9   :  { %v276_v34 = vpop.f32.mrb[2].mxu1 }
 0x1fa   :  { %v330_v35 = vmul.f32 -1.442695, %v274_v32  ;;  %v277_v36 = vadd.f32 %v321_v30, %v276_v34  ;;  %v389_v37 = vpop.f32.mrb[3].mxu1 }
 0x1fc   :  { %415 = vpow2.f32 %v330_v35  ;;  %v331_v38 = vmul.f32 -1.442695, %v277_v36 }
 0x1fe   :  { %417 = vpow2.f32 %v331_v38 }
 0x206   :  { %v416_v39 = vpop.eup %415 }
 0x207   :  { %v286_v40 = vadd.f32 1.0, %v416_v39 }
 0x208   :  { %v418_v41 = vpop.eup %417 }
 0x209   :  { %419 = vrcp.f32 %v286_v40  ;;  %v287_v42 = vadd.f32 1.0, %v418_v41 }
 0x20b   :  { %421 = vrcp.f32 %v287_v42 }
 0x213   :  { %v420_v43 = vpop.eup %419 }
 0x214   :  { %292 = vst [vmem:[#allocation7] sm:$0xff] %v420_v43 }
 0x215   :  { %v422_v44 = vpop.eup %421 }
 0x216   :  { %293 = vst [vmem:[#allocation7 + $0x8] sm:$0xff] %v422_v44 }
 0x217   :  { %478 = shalt.err (!%p475_p6)
}
 0x218   :  { %s479_s27 = scalar_lea.hbm %s587_s5, 256 }
 0x219   :  { %p480_p7 = scmp.ne.s32.totalorder %s587_s5, %s479_s27  ;;  %p483_p8 = scmp.lt.u32.totalorder %s479_s27, %s587_s5 }
 0x21b   :  { %p485_p9 = pnand %p483_p8, %p480_p7 }
 0x21d   :  { %488 = shalt.err (!%p485_p9)
}
 0x21e   :  { %s502_s7 = smov 128   ;;  %s503_s8 = smov 8  }
 0x21f   :  { %305 = dma.vmem_to_hbm [thread:$0]  %s300_s24, 256, %s587_s5, [#allocation4], %s502_s7, %s502_s7, %s503_s8  }
 0x220   :  { %493 = dma.done.wait [#allocation4], 256  }
 0x221   :  { %494 = vsyncadd [#allocation4], 4294967040 }
 0x222   :  { %309 = vsyncpa [#allocation3], 1 }
 0x223   :  { %310 = vsyncpa [#allocation6], 1 }
 0x224   :  { %311 = vsyncpa [#allocation4], 1 }

</bundles_post_ra>
